<compile_context>
chip_gen: v7x
topology: tpu7x:2x2x1
jax: 0.10.0
libtpu: 0.0.40
codegen_flags: <defaults>
</compile_context>

<pallas_src>
import jax
import jax.numpy as jnp
from jax.experimental import pallas as pl
from jax.experimental.pallas import tpu as pltpu


def _chomp_kernel(x_ref, o_ref):
    # x_ref: (row_blk, lane_in), o_ref: (row_blk, lane_out), lane_out <= lane_in.
    # Static prefix slice; when the block shapes match it is a straight copy.
    o_ref[...] = x_ref[:, : o_ref.shape[-1]]


def _round_up(x: int, m: int) -> int:
    return ((x + m - 1) // m) * m


def _sublane_multiple(dtype) -> int:
    """Row-tile rounding granularity: packed dtypes pack along sublanes."""
    itemsize = jnp.dtype(dtype).itemsize
    if itemsize >= 4:
        return 8
    if itemsize == 2:
        return 16
    return 32


def _vmem_limit_bytes() -> int:
    """Generation-aware scoped-VMEM limit (3/4 of physical, capped at 64 MiB)."""
    try:
        phys = int(pltpu.get_tpu_info().vmem_capacity_bytes)
    except Exception:
        phys = 64 * 1024 * 1024  # conservative fallback (v7x physical VMEM)
    return max(16 * 1024 * 1024, min(3 * phys // 4, 64 * 1024 * 1024))


def chomp1d(x: jax.Array, chomp_size: int) -> jax.Array:
    """Pallas equivalent of Chomp1d(chomp_size).forward(x) for x of shape (N, C, L)."""
    assert x.ndim == 3, "expected (N, C, L)"
    n, c, length = x.shape
    assert 0 <= chomp_size < length, "chomp_size must be in [0, L)"
    if chomp_size == 0:
        # Practical identity. (Literal PyTorch `x[:, :, :-0]` is an empty slice,
        # a degenerate case never used by the TCN.)
        return x

    l_out = length - chomp_size
    rows = n * c
    x2 = x.reshape(rows, length)

    itemsize = jnp.dtype(x.dtype).itemsize
    sub = _sublane_multiple(x.dtype)

    vmem_limit = _vmem_limit_bytes()
    # Combined in+out bytes per grid step; double buffering => ~2x resident,
    # leaving ~1/3 of the scoped limit as headroom.
    step_budget = vmem_limit // 3

    # Input lane cover: smallest multiple of 128 covering l_out, capped at L.
    # Either a multiple of 128 or the full dim, so the (8, 128) block rule holds,
    # and the chomped tail is skipped on the HBM read whenever chomp_size >= 128.
    l_in_cover = min(length, _round_up(l_out, 128))
    per_row_bytes = (l_in_cover + l_out) * itemsize
    min_row_blk = min(rows, sub)

    if min_row_blk * per_row_bytes <= step_budget:
        # ---- 1-D tiling over rows (common case) ----
        row_blk = min(rows, max(1, step_budget // per_row_bytes))
        row_blk = max(min_row_blk, (row_blk // sub) * sub)
        # Guarantee >= 2 grid steps when rows allow it, so the parallel axis
        # can shard across both TensorCores on v7x.
        if row_blk >= rows and rows > sub:
            row_blk = max(sub, _round_up(pl.cdiv(rows, 2), sub))
        grid = (pl.cdiv(rows, row_blk),)
        in_specs = [pl.BlockSpec((row_blk, l_in_cover), lambda i: (i, 0))]
        out_specs = pl.BlockSpec((row_blk, l_out), lambda i: (i, 0))
        dims = ("parallel",)
    else:
        # ---- 2-D tiling (rows x lanes) for very long L, bounded VMEM ----
        row_blk = min(_round_up(rows, sub), 256)
        lane_blk = step_budget // (2 * row_blk * itemsize)
        lane_blk = max(128, (lane_blk // 128) * 128)
        lane_blk = min(lane_blk, _round_up(l_out, 128))
        grid = (pl.cdiv(rows, row_blk), pl.cdiv(l_out, lane_blk))
        # Output lanes are a prefix of input lanes, so lane block indices match.
        in_specs = [pl.BlockSpec((row_blk, lane_blk), lambda i, j: (i, j))]
        out_specs = pl.BlockSpec((row_blk, lane_blk), lambda i, j: (i, j))
        dims = ("parallel", "parallel")

    out2 = pl.pallas_call(
        _chomp_kernel,
        out_shape=jax.ShapeDtypeStruct((rows, l_out), x.dtype),
        grid=grid,
        in_specs=in_specs,
        out_specs=out_specs,
        compiler_params=pltpu.CompilerParams(
            dimension_semantics=dims,
            vmem_limit_bytes=vmem_limit,
        ),
    )(x2)

    return out2.reshape(n, c, l_out)


if __name__ == "__main__":
    # Chomp1d has no parameters, only chomp_size. Typical TCN usage:
    # chomp_size = (kernel_size - 1) * dilation, applied after a causally
    # padded Conv1d whose output is (N, C, L + chomp_size).
    key = jax.random.PRNGKey(0)

    # Case 1: small fp32, single grid step.
    N, C, L = 2, 4, 16
    chomp_size = 3
    x = jax.random.normal(key, (N, C, L), dtype=jnp.float32)
    y = jax.block_until_ready(chomp1d(x, chomp_size))
    y_ref = x[:, :, : L - chomp_size]
    assert y.shape == (N, C, L - chomp_size)
    assert y.dtype == x.dtype
    assert bool(jnp.array_equal(y, y_ref))

    # Case 2: bf16, rows > sublane multiple -> exercises the >=2-step path.
    N2, C2, L2, chomp2 = 3, 8, 160, 7
    x2 = jax.random.normal(jax.random.PRNGKey(1), (N2, C2, L2), dtype=jnp.bfloat16)
    y2 = jax.block_until_ready(chomp1d(x2, chomp2))
    y2_ref = x2[:, :, : L2 - chomp2]
    assert y2.shape == (N2, C2, L2 - chomp2)
    assert y2.dtype == x2.dtype
    assert bool(jnp.array_equal(y2, y2_ref))

    print("KERNEL_OK")
</pallas_src>

<mosaic_0001>
module attributes {stable_mosaic.version = 11 : i64} {
  func.func @_chomp_kernel(%arg0: i32, %arg1: memref<8x16xf32, #tpu.memory_space<vmem>>, %arg2: memref<8x13xf32, #tpu.memory_space<vmem>>) attributes {dimension_semantics = [#tpu.dimension_semantics<parallel>], iteration_bounds = array<i64: 1>, scalar_prefetch = 0 : i64, scratch_operands = 0 : i64, tpu.core_type = #tpu.core_type<tc>, window_params = [{transform_indices = @transform_0, window_bounds = array<i64: 8, 16>}, {transform_indices = @transform_1, window_bounds = array<i64: 8, 13>}]} {
    %c0 = arith.constant 0 : index
    %c0_0 = arith.constant 0 : index
    %0 = vector.load %arg1[%c0, %c0_0] : memref<8x16xf32, #tpu.memory_space<vmem>>, vector<8x13xf32>
    %c0_1 = arith.constant 0 : index
    %c0_2 = arith.constant 0 : index
    %1 = vector.load %arg2[%c0_1, %c0_2] : memref<8x13xf32, #tpu.memory_space<vmem>>, vector<8x13xf32>
    tpu.vector_store %arg2[%c0_1, %c0_2], %0 {strides = array<i32>} : memref<8x13xf32, #tpu.memory_space<vmem>>, vector<8x13xf32>,
    return
  }
  func.func @transform_0(%arg0: i32) -> (i32, i32) {
    %c0_i32 = arith.constant 0 : i32
    %c0_i32_0 = arith.constant 0 : i32
    return %arg0, %c0_i32 : i32, i32
  }
  func.func @transform_1(%arg0: i32) -> (i32, i32) {
    %c0_i32 = arith.constant 0 : i32
    %c0_i32_0 = arith.constant 0 : i32
    return %arg0, %c0_i32 : i32, i32
  }
}

</mosaic_0001>

<bundles_post_ra>
// kernel: tpu_custom_call.1
= control target key start
LH: loop header
LB: loop body
LE: loop exit
PB: predicated region body
PF: predicated region fallthrough
CT: control target
= control target key end

     0   :  { %6 = vsyncpa [#allocation3], 0  ;;  %s125_s0 = inlined_call_operand.hbm [shape: f32[8,16], index: 0, kind: input, shape index: {}]   ;;  %s126_s1 = inlined_call_operand.hbm [shape: f32[8,13], index: 1, kind: output, shape index: {}]  }
   0x1   :  { %7 = vsyncpa [#allocation4], 0  ;;  %s89_s6 = smov [#allocation2]   ;;  %s41_s10 = scalar_lea.hbm %s125_s0, 128 }
   0x2   :  { %s14_s7 = sshll.u32 %s89_s6, 4  ;;  %p42_p0 = scmp.ne.s32.totalorder %s125_s0, %s41_s10  ;;  %s15_s7 = int_to_ptr.vmem [resolvable:$true] %s14_s7 }
   0x3   :  { %p45_p1 = scmp.lt.u32.totalorder %s41_s10, %s125_s0 }
   0x5   :  { %p47_p2 = pnand %p45_p1, %p42_p0 }
   0x7   :  { %50 = shalt.err (!%p47_p2)
}
   0x8   :  { %s51_s15 = scalar_lea.vmem %s15_s7, 128  ;;  %p56_p4 = scmp.lt.s32.totalorder %s15_s7, %s15_s7 }
   0x9   :  { %p52_p3 = scmp.ne.s32.totalorder %s15_s7, %s51_s15  ;;  %p57_p5 = scmp.lt.s32.totalorder %s51_s15, %s51_s15 }
   0xb   :  { %p58_p6 = por %p57_p5, %p56_p4 }
   0xd   :  { %p59_p7 = pnand %p58_p6, %p52_p3 }
   0xf   :  { %62 = shalt.err (!%p59_p7)
}
  0x10   :  { %17 = dma.hbm_to_vmem [thread:$0]  %s125_s0, 128, %s15_s7, [#allocation3]  }
  0x11   :  { %85 = dma.done.wait [#allocation3], 128  }
  0x12   :  { %86 = vsyncadd [#allocation3], 4294967168  ;;  %s90_s18 = smov [#allocation5]   ;;  %vm22_vm0 = vcmask 105472   ;;  %v21_v0 = vld [vmem:[#allocation2] sm:$0xff] }
  0x13   :  { %s30_s19 = sshll.u32 %s90_s18, 4  ;;  %23 = vst.msk [vmem:[#allocation5] sm:$0xff] %vm22_vm0, %v21_v0  ;;  %s31_s19 = int_to_ptr.vmem [resolvable:$true] %s30_s19 }
  0x14   :  { %s63_s20 = scalar_lea.vmem %s31_s19, 128  ;;  %p68_p9 = scmp.lt.s32.totalorder %s31_s19, %s31_s19 }
  0x15   :  { %p64_p8 = scmp.ne.s32.totalorder %s31_s19, %s63_s20  ;;  %p69_p10 = scmp.lt.s32.totalorder %s63_s20, %s63_s20 }
  0x17   :  { %p70_p11 = por %p69_p10, %p68_p9 }
  0x19   :  { %p71_p12 = pnand %p70_p11, %p64_p8 }
  0x1b   :  { %74 = shalt.err (!%p71_p12)
}
  0x1c   :  { %s75_s23 = scalar_lea.hbm %s126_s1, 128 }
  0x1d   :  { %p76_p13 = scmp.ne.s32.totalorder %s126_s1, %s75_s23  ;;  %p79_p0 = scmp.lt.u32.totalorder %s75_s23, %s126_s1 }
  0x1f   :  { %p81_p1 = pnand %p79_p0, %p76_p13 }
  0x21   :  { %84 = shalt.err (!%p81_p1)
}
  0x22   :  { %33 = dma.vmem_to_hbm [thread:$0]  %s31_s19, 128, %s126_s1, [#allocation4]  }
  0x23   :  { %87 = dma.done.wait [#allocation4], 128  }
  0x24   :  { %88 = vsyncadd [#allocation4], 4294967168 }
  0x25   :  { %37 = vsyncpa [#allocation3], 1 }
  0x26   :  { %38 = vsyncpa [#allocation4], 1 }

</bundles_post_ra>
